<compile_context>
chip_gen: v7x
topology: tpu7x:2x2x1
jax: 0.10.0
libtpu: 0.0.40
codegen_flags: <defaults>
</compile_context>

<pallas_src>
import jax
import jax.numpy as jnp
from jax.experimental import pallas as pl
from jax.experimental.pallas import tpu as pltpu


def _round_up(x, m):
    return ((x + m - 1) // m) * m


# ----------------------------- Pallas kernel --------------------------------
def _cls_head_kernel(cls_ref, w1_ref, b1_ref, w2_ref, b2_ref, out_ref, acc_ref):
    """logits = tanh(cls @ W1 + b1) @ W2 + b2, K-tiled over W1's reduction axis.

    Grid: (batch_tiles, k_tiles), K innermost (reduction axis last).
      cls_ref : (TB, TK)   bf16  -- CLS activations: batch tile x K slice
      w1_ref  : (TK, H)    bf16  -- K-sliced first-layer weight (pipelined DMA)
      b1_ref  : (1, H)     f32   -- resident
      w2_ref  : (H, Cpad)  bf16  -- resident
      b2_ref  : (1, Cpad)  f32   -- resident
      out_ref : (TB, Cpad) f32   -- lane-dense; written on the last K step only
      acc_ref : (TB, H)    f32   -- VMEM scratch accumulator for cls @ W1
    """
    k = pl.program_id(1)

    @pl.when(k == 0)
    def _():
        acc_ref[...] = jnp.zeros_like(acc_ref)

    # bf16 operands on the MXU, f32 accumulation.
    acc_ref[...] += jnp.dot(cls_ref[...], w1_ref[...],
                            preferred_element_type=jnp.float32)

    @pl.when(k == pl.num_programs(1) - 1)
    def _():
        # Bias add + tanh in f32 (VPU / EUP).
        h = jnp.tanh(acc_ref[...] + b1_ref[...])                   # (TB, H) f32
        logits = jnp.dot(h.astype(jnp.bfloat16), w2_ref[...],
                         preferred_element_type=jnp.float32)       # (TB, Cpad)
        out_ref[...] = logits + b2_ref[...]


# -------------------------- parameter preparation ----------------------------
def prepare_classifier_params(w1, b1, w2, b2):
    """One-time cast/pad of the classifier parameters (hoisted out of the
    per-call path).  bf16 weights halve the weight DMA; the class dimension is
    zero-padded to a lane-dense multiple of 128; biases are f32 (1, N) rows."""
    H = w1.shape[0]
    C = w2.shape[1]
    c_pad = _round_up(C, 128)
    w1_bf = w1.astype(jnp.bfloat16)                                      # (H, H)
    w2_bf = jnp.pad(w2, ((0, 0), (0, c_pad - C))).astype(jnp.bfloat16)   # (H, Cpad)
    b1_2d = b1.reshape(1, H).astype(jnp.float32)                         # (1, H)
    b2_2d = jnp.pad(b2, (0, c_pad - C)).reshape(1, c_pad).astype(jnp.float32)
    return (w1_bf, b1_2d, w2_bf, b2_2d)


# ------------------------------- wrapper -------------------------------------
def cls_classifier(cls_hidden, params, num_classes, *, batch_tile=None,
                   k_tile=None):
    """Applies the SingleCLSClassifier head to the (already-sliced) CLS token.

    cls_hidden : (B, H) CLS activations (bf16 preferred; cast if not).
    params     : output of prepare_classifier_params (pre-cast, pre-padded).
    Returns logits of shape (B, num_classes) float32.
    """
    w1_bf, b1_2d, w2_bf, b2_2d = params
    B, H = cls_hidden.shape
    c_pad = w2_bf.shape[1]
    C = num_classes

    if cls_hidden.dtype != jnp.bfloat16:
        cls_hidden = cls_hidden.astype(jnp.bfloat16)

    # Batch tile: multiple of 8 sublanes; 256 for big batches on v6e/v7x MXUs.
    if batch_tile is None:
        batch_tile = min(128, _round_up(B, 8))
        if B >= 256:
            # TODO(synk): keep 128 on v5e (128x128 MXUs) once chip detection is wired up.
            batch_tile = 256
    tb = batch_tile

    # K (reduction) tile for W1.  ~512 keeps the W1 slice + double buffer well
    # under VMEM at production H while feeding the MXU.
    if k_tile is None:
        k_tile = min(512, H)
    tk = k_tile if H % k_tile == 0 else H

    b_pad = _round_up(B, tb)
    if b_pad != B:
        # Pad only the tiny (B, H) CLS slab -- never the full (S, B, H) tensor.
        cls_hidden = jnp.pad(cls_hidden, ((0, b_pad - B), (0, 0)))

    num_b_tiles = b_pad // tb
    num_k_tiles = H // tk

    # v7x: only split the batch grid across the two TensorCores when there is
    # enough batch work; otherwise a 2-way split just doubles weight traffic.
    batch_sem = "parallel" if num_b_tiles >= 4 else "arbitrary"

    # Explicit scoped-VMEM limit: <=100 MiB, clamped to 7/8 of physical VMEM.
    try:
        vmem_cap = int(pltpu.get_tpu_info().vmem_capacity_bytes)
    except Exception:
        vmem_cap = 64 * 1024 * 1024
    vmem_limit = min(100 * 1024 * 1024, (vmem_cap // 8) * 7)

    cost = pl.CostEstimate(
        flops=2 * B * H * (H + c_pad),
        transcendentals=B * H,
        bytes_accessed=(2 * H * (H + c_pad)      # bf16 weights
                        + 2 * b_pad * H          # bf16 CLS activations
                        + 4 * b_pad * c_pad      # f32 logits
                        + 4 * (H + c_pad)),      # f32 biases
    )

    def build_call(use_buffer_hints):
        def spec(shape, index_map, buffers=None):
            if use_buffer_hints and buffers is not None:
                return pl.BlockSpec(shape, index_map,
                                    pipeline_mode=pl.Buffered(buffers))
            return pl.BlockSpec(shape, index_map)

        grid_spec = pltpu.PrefetchScalarGridSpec(
            num_scalar_prefetch=0,
            grid=(num_b_tiles, num_k_tiles),
            in_specs=[
                # CLS activations: batch tile x K slice.
                spec((tb, tk), lambda i, k: (i, k)),
                # W1: K-sliced along the reduction axis, pipelined so the
                # weight DMA overlaps the MXU work.
                spec((tk, H), lambda i, k: (k, 0), buffers=2),
                # Resident params: constant index maps -> single buffer.
                spec((1, H), lambda i, k: (0, 0), buffers=1),
                spec((H, c_pad), lambda i, k: (0, 0), buffers=1),
                spec((1, c_pad), lambda i, k: (0, 0), buffers=1),
            ],
            out_specs=pl.BlockSpec((tb, c_pad), lambda i, k: (i, 0)),
            scratch_shapes=[pltpu.VMEM((tb, H), jnp.float32)],
        )
        return pl.pallas_call(
            _cls_head_kernel,
            out_shape=jax.ShapeDtypeStruct((b_pad, c_pad), jnp.float32),
            grid_spec=grid_spec,
            compiler_params=pltpu.CompilerParams(
                dimension_semantics=(batch_sem, "arbitrary"),
                vmem_limit_bytes=vmem_limit,
            ),
            cost_estimate=cost,
        )

    args = (cls_hidden, w1_bf, b1_2d, w2_bf, b2_2d)
    try:
        out = build_call(True)(*args)
    except Exception:
        # Buffering hints are a pure-performance knob; fall back to default
        # pipelining if this JAX/libtpu build rejects pipeline_mode.
        out = build_call(False)(*args)

    return out[:B, :C]


# --------------------------- synthetic base model ----------------------------
def synthetic_base_model(input_ids, attention_mask, embedding_table):
    """Deterministic stand-in for `base_model`: embedding lookup, masked.

    Returns last_hidden_state SEQ-MAJOR in bf16, shape (S, B, H), so the
    downstream CLS slice is a contiguous leading-axis slab and the Pallas
    kernel consumes MXU-native bf16 activations with no extra cast."""
    emb = jnp.take(embedding_table, input_ids.T, axis=0)              # (S, B, H)
    emb = emb * attention_mask.T[..., None].astype(emb.dtype)
    return emb.astype(jnp.bfloat16)


# ----------------------------------- main ------------------------------------
if __name__ == "__main__":
    B, S, H, C, V = 2, 8, 32, 5, 100   # batch, seq, hidden, num_classes, vocab

    key = jax.random.PRNGKey(0)
    k_emb, k_ids, k_w1, k_b1, k_w2, k_b2 = jax.random.split(key, 6)

    # Deterministic synthetic inputs / parameters.
    input_ids = jax.random.randint(k_ids, (B, S), 0, V, dtype=jnp.int32)
    attention_mask = jnp.ones((B, S), dtype=jnp.int32)
    embedding_table = jax.random.normal(k_emb, (V, H), dtype=jnp.float32) * 0.1

    # Classifier parameters (nn.Linear(H, H) / nn.Linear(H, C), stored
    # transposed so the kernel computes x @ W).
    w1 = jax.random.normal(k_w1, (H, H), dtype=jnp.float32) * (1.0 / jnp.sqrt(H))
    b1 = jax.random.normal(k_b1, (H,), dtype=jnp.float32) * 0.01
    w2 = jax.random.normal(k_w2, (H, C), dtype=jnp.float32) * (1.0 / jnp.sqrt(H))
    b2 = jax.random.normal(k_b2, (C,), dtype=jnp.float32) * 0.01

    # One-time parameter cast/pad -- OUTSIDE the per-call forward path.
    params = prepare_classifier_params(w1, b1, w2, b2)

    # Forward pass: base model (plain JAX stub) + classifier head (Pallas).
    last_hidden_state = synthetic_base_model(input_ids, attention_mask,
                                             embedding_table)       # (S, B, H) bf16
    cls_hidden = last_hidden_state[0]                                # (B, H) bf16 CLS token
    logits = cls_classifier(cls_hidden, params, C)
    logits = jax.block_until_ready(logits)

    # Pure-JAX f32 reference of the classifier head on the same CLS activations.
    cls_f32 = cls_hidden.astype(jnp.float32)
    ref = jnp.tanh(cls_f32 @ w1 + b1) @ w2 + b2
    assert logits.shape == (B, C)
    # Kernel matmuls run in bf16 (f32 accumulate) -> loose tolerance vs f32 ref.
    assert jnp.allclose(logits, ref, atol=2e-2, rtol=2e-2), (
        f"max abs err {jnp.max(jnp.abs(logits - ref))}")

    print("KERNEL_OK")
</pallas_src>

<mosaic_0001>
module attributes {stable_mosaic.version = 11 : i64} {
  func.func @_cls_head_kernel(%arg0: i32, %arg1: i32, %arg2: memref<8x32xbf16, #tpu.memory_space<vmem>>, %arg3: memref<32x32xbf16, #tpu.memory_space<vmem>>, %arg4: memref<1x32xf32, #tpu.memory_space<vmem>>, %arg5: memref<32x128xbf16, #tpu.memory_space<vmem>>, %arg6: memref<1x128xf32, #tpu.memory_space<vmem>>, %arg7: memref<8x128xf32, #tpu.memory_space<vmem>>, %arg8: memref<8x32xf32, #tpu.memory_space<vmem>>) attributes {dimension_semantics = [#tpu.dimension_semantics<arbitrary>, #tpu.dimension_semantics<arbitrary>], iteration_bounds = array<i64: 1, 1>, scalar_prefetch = 0 : i64, scratch_operands = 1 : i64, tpu.core_type = #tpu.core_type<tc>, window_params = [{transform_indices = @transform_0, window_bounds = array<i64: 8, 32>}, {pipeline_mode = #tpu.pipeline_mode<double_buffered>, transform_indices = @transform_1, window_bounds = array<i64: 32, 32>}, {pipeline_mode = #tpu.pipeline_mode<synchronous>, transform_indices = @transform_2, window_bounds = array<i64: 1, 32>}, {pipeline_mode = #tpu.pipeline_mode<synchronous>, transform_indices = @transform_3, window_bounds = array<i64: 32, 128>}, {pipeline_mode = #tpu.pipeline_mode<synchronous>, transform_indices = @transform_4, window_bounds = array<i64: 1, 128>}, {transform_indices = @transform_5, window_bounds = array<i64: 8, 128>}]} {
    %c0_i32 = arith.constant 0 : i32
    %0 = arith.cmpi eq, %arg1, %c0_i32 : i32
    %1 = arith.extui %0 : i1 to i32
    %c0_i32_0 = arith.constant 0 : i32
    %2 = arith.cmpi ne, %1, %c0_i32_0 : i32
    scf.if %2 {
      %cst_10 = arith.constant 0.000000e+00 : f32
      %12 = vector.broadcast %cst_10 : f32 to vector<8x32xf32>
      %c0_11 = arith.constant 0 : index
      %c0_12 = arith.constant 0 : index
      %13 = vector.load %arg8[%c0_11, %c0_12] : memref<8x32xf32, #tpu.memory_space<vmem>>, vector<8x32xf32>
      tpu.vector_store %arg8[%c0_11, %c0_12], %12 {strides = array<i32>} : memref<8x32xf32, #tpu.memory_space<vmem>>, vector<8x32xf32>,
    } else {
    }
    %c0 = arith.constant 0 : index
    %c0_1 = arith.constant 0 : index
    %3 = vector.load %arg8[%c0, %c0_1] : memref<8x32xf32, #tpu.memory_space<vmem>>, vector<8x32xf32>
    %c0_2 = arith.constant 0 : index
    %c0_3 = arith.constant 0 : index
    %4 = vector.load %arg2[%c0_2, %c0_3] : memref<8x32xbf16, #tpu.memory_space<vmem>>, vector<8x32xbf16>
    %c0_4 = arith.constant 0 : index
    %c0_5 = arith.constant 0 : index
    %5 = vector.load %arg3[%c0_4, %c0_5] : memref<32x32xbf16, #tpu.memory_space<vmem>>, vector<32x32xbf16>
    %cst = arith.constant dense<0.000000e+00> : vector<8x32xf32>
    %6 = tpu.matmul %4, %5, %cst {dimension_numbers = #tpu.dot_dimension_numbers<[1], [0], [0], [1], [0, 0, 1, 1], [], []>} : vector<8x32xbf16>, vector<32x32xbf16>, vector<8x32xf32> -> vector<8x32xf32>
    %7 = arith.addf %3, %6 : vector<8x32xf32>
    %c0_6 = arith.constant 0 : index
    %c0_7 = arith.constant 0 : index
    %8 = vector.load %arg8[%c0_6, %c0_7] : memref<8x32xf32, #tpu.memory_space<vmem>>, vector<8x32xf32>
    tpu.vector_store %arg8[%c0_6, %c0_7], %7 {strides = array<i32>} : memref<8x32xf32, #tpu.memory_space<vmem>>, vector<8x32xf32>,
    %c0_i32_8 = arith.constant 0 : i32
    %9 = arith.cmpi eq, %arg1, %c0_i32_8 : i32
    %10 = arith.extui %9 : i1 to i32
    %c0_i32_9 = arith.constant 0 : i32
    %11 = arith.cmpi ne, %10, %c0_i32_9 : i32
    scf.if %11 {
      %c0_10 = arith.constant 0 : index
      %c0_11 = arith.constant 0 : index
      %12 = vector.load %arg8[%c0_10, %c0_11] : memref<8x32xf32, #tpu.memory_space<vmem>>, vector<8x32xf32>
      %c0_12 = arith.constant 0 : index
      %c0_13 = arith.constant 0 : index
      %13 = vector.load %arg4[%c0_12, %c0_13] : memref<1x32xf32, #tpu.memory_space<vmem>>, vector<1x32xf32>
      %14 = vector.broadcast %13 : vector<1x32xf32> to vector<8x32xf32>
      %15 = arith.addf %12, %14 : vector<8x32xf32>
      %16 = math.tanh %15 : vector<8x32xf32>
      %17 = arith.truncf %16 : vector<8x32xf32> to vector<8x32xbf16>
      %c0_14 = arith.constant 0 : index
      %c0_15 = arith.constant 0 : index
      %18 = vector.load %arg5[%c0_14, %c0_15] : memref<32x128xbf16, #tpu.memory_space<vmem>>, vector<32x128xbf16>
      %cst_16 = arith.constant dense<0.000000e+00> : vector<8x128xf32>
      %19 = tpu.matmul %17, %18, %cst_16 {dimension_numbers = #tpu.dot_dimension_numbers<[1], [0], [0], [1], [0, 0, 1, 1], [], []>} : vector<8x32xbf16>, vector<32x128xbf16>, vector<8x128xf32> -> vector<8x128xf32>
      %c0_17 = arith.constant 0 : index
      %c0_18 = arith.constant 0 : index
      %20 = vector.load %arg6[%c0_17, %c0_18] : memref<1x128xf32, #tpu.memory_space<vmem>>, vector<1x128xf32>
      %21 = vector.broadcast %20 : vector<1x128xf32> to vector<8x128xf32>
      %22 = arith.addf %19, %21 : vector<8x128xf32>
      %c0_19 = arith.constant 0 : index
      %c0_20 = arith.constant 0 : index
      %23 = vector.load %arg7[%c0_19, %c0_20] : memref<8x128xf32, #tpu.memory_space<vmem>>, vector<8x128xf32>
      tpu.vector_store %arg7[%c0_19, %c0_20], %22 {strides = array<i32>} : memref<8x128xf32, #tpu.memory_space<vmem>>, vector<8x128xf32>,
    } else {
    }
    return
  }
  func.func @transform_0(%arg0: i32, %arg1: i32) -> (i32, i32) {
    %c0_i32 = arith.constant 0 : i32
    return %arg0, %arg1 : i32, i32
  }
  func.func @transform_1(%arg0: i32, %arg1: i32) -> (i32, i32) {
    %c0_i32 = arith.constant 0 : i32
    %c0_i32_0 = arith.constant 0 : i32
    return %arg1, %c0_i32 : i32, i32
  }
  func.func @transform_2(%arg0: i32, %arg1: i32) -> (i32, i32) {
    %c0_i32 = arith.constant 0 : i32
    %c0_i32_0 = arith.constant 0 : i32
    %c0_i32_1 = arith.constant 0 : i32
    return %c0_i32, %c0_i32_0 : i32, i32
  }
  func.func @transform_3(%arg0: i32, %arg1: i32) -> (i32, i32) {
    %c0_i32 = arith.constant 0 : i32
    %c0_i32_0 = arith.constant 0 : i32
    %c0_i32_1 = arith.constant 0 : i32
    return %c0_i32, %c0_i32_0 : i32, i32
  }
  func.func @transform_4(%arg0: i32, %arg1: i32) -> (i32, i32) {
    %c0_i32 = arith.constant 0 : i32
    %c0_i32_0 = arith.constant 0 : i32
    %c0_i32_1 = arith.constant 0 : i32
    return %c0_i32, %c0_i32_0 : i32, i32
  }
  func.func @transform_5(%arg0: i32, %arg1: i32) -> (i32, i32) {
    %c0_i32 = arith.constant 0 : i32
    %c0_i32_0 = arith.constant 0 : i32
    return %arg0, %c0_i32 : i32, i32
  }
}

module attributes {stable_mosaic.version = 11 : i64} {
  func.func @_cls_head_kernel(%arg0: i32, %arg1: i32, %arg2: memref<8x32xbf16, #tpu.memory_space<vmem>>, %arg3: memref<32x32xbf16, #tpu.memory_space<vmem>>, %arg4: memref<1x32xf32, #tpu.memory_space<vmem>>, %arg5: memref<32x128xbf16, #tpu.memory_space<vmem>>, %arg6: memref<1x128xf32, #tpu.memory_space<vmem>>, %arg7: memref<8x128xf32, #tpu.memory_space<vmem>>, %arg8: memref<8x32xf32, #tpu.memory_space<vmem>>) attributes {dimension_semantics = [#tpu.dimension_semantics<arbitrary>, #tpu.dimension_semantics<arbitrary>], iteration_bounds = array<i64: 1, 1>, scalar_prefetch = 0 : i64, scratch_operands = 1 : i64, tpu.core_type = #tpu.core_type<tc>, window_params = [{transform_indices = @transform_0, window_bounds = array<i64: 8, 32>}, {transform_indices = @transform_1, window_bounds = array<i64: 32, 32>}, {pipeline_mode = #tpu.pipeline_mode<synchronous>, transform_indices = @transform_2, window_bounds = array<i64: 1, 32>}, {pipeline_mode = #tpu.pipeline_mode<synchronous>, transform_indices = @transform_3, window_bounds = array<i64: 32, 128>}, {pipeline_mode = #tpu.pipeline_mode<synchronous>, transform_indices = @transform_4, window_bounds = array<i64: 1, 128>}, {transform_indices = @transform_5, window_bounds = array<i64: 8, 128>}]} {
    %c0_i32 = arith.constant 0 : i32
    %0 = arith.cmpi eq, %arg1, %c0_i32 : i32
    %1 = arith.extui %0 : i1 to i32
    %c0_i32_0 = arith.constant 0 : i32
    %2 = arith.cmpi ne, %1, %c0_i32_0 : i32
    scf.if %2 {
      %cst_10 = arith.constant 0.000000e+00 : f32
      %12 = vector.broadcast %cst_10 : f32 to vector<8x32xf32>
      %c0_11 = arith.constant 0 : index
      %c0_12 = arith.constant 0 : index
      %13 = vector.load %arg8[%c0_11, %c0_12] : memref<8x32xf32, #tpu.memory_space<vmem>>, vector<8x32xf32>
      tpu.vector_store %arg8[%c0_11, %c0_12], %12 {strides = array<i32>} : memref<8x32xf32, #tpu.memory_space<vmem>>, vector<8x32xf32>,
    } else {
    }
    %c0 = arith.constant 0 : index
    %c0_1 = arith.constant 0 : index
    %3 = vector.load %arg8[%c0, %c0_1] : memref<8x32xf32, #tpu.memory_space<vmem>>, vector<8x32xf32>
    %c0_2 = arith.constant 0 : index
    %c0_3 = arith.constant 0 : index
    %4 = vector.load %arg2[%c0_2, %c0_3] : memref<8x32xbf16, #tpu.memory_space<vmem>>, vector<8x32xbf16>
    %c0_4 = arith.constant 0 : index
    %c0_5 = arith.constant 0 : index
    %5 = vector.load %arg3[%c0_4, %c0_5] : memref<32x32xbf16, #tpu.memory_space<vmem>>, vector<32x32xbf16>
    %cst = arith.constant dense<0.000000e+00> : vector<8x32xf32>
    %6 = tpu.matmul %4, %5, %cst {dimension_numbers = #tpu.dot_dimension_numbers<[1], [0], [0], [1], [0, 0, 1, 1], [], []>} : vector<8x32xbf16>, vector<32x32xbf16>, vector<8x32xf32> -> vector<8x32xf32>
    %7 = arith.addf %3, %6 : vector<8x32xf32>
    %c0_6 = arith.constant 0 : index
    %c0_7 = arith.constant 0 : index
    %8 = vector.load %arg8[%c0_6, %c0_7] : memref<8x32xf32, #tpu.memory_space<vmem>>, vector<8x32xf32>
    tpu.vector_store %arg8[%c0_6, %c0_7], %7 {strides = array<i32>} : memref<8x32xf32, #tpu.memory_space<vmem>>, vector<8x32xf32>,
    %c0_i32_8 = arith.constant 0 : i32
    %9 = arith.cmpi eq, %arg1, %c0_i32_8 : i32
    %10 = arith.extui %9 : i1 to i32
    %c0_i32_9 = arith.constant 0 : i32
    %11 = arith.cmpi ne, %10, %c0_i32_9 : i32
    scf.if %11 {
      %c0_10 = arith.constant 0 : index
      %c0_11 = arith.constant 0 : index
      %12 = vector.load %arg8[%c0_10, %c0_11] : memref<8x32xf32, #tpu.memory_space<vmem>>, vector<8x32xf32>
      %c0_12 = arith.constant 0 : index
      %c0_13 = arith.constant 0 : index
      %13 = vector.load %arg4[%c0_12, %c0_13] : memref<1x32xf32, #tpu.memory_space<vmem>>, vector<1x32xf32>
      %14 = vector.broadcast %13 : vector<1x32xf32> to vector<8x32xf32>
      %15 = arith.addf %12, %14 : vector<8x32xf32>
      %16 = math.tanh %15 : vector<8x32xf32>
      %17 = arith.truncf %16 : vector<8x32xf32> to vector<8x32xbf16>
      %c0_14 = arith.constant 0 : index
      %c0_15 = arith.constant 0 : index
      %18 = vector.load %arg5[%c0_14, %c0_15] : memref<32x128xbf16, #tpu.memory_space<vmem>>, vector<32x128xbf16>
      %cst_16 = arith.constant dense<0.000000e+00> : vector<8x128xf32>
      %19 = tpu.matmul %17, %18, %cst_16 {dimension_numbers = #tpu.dot_dimension_numbers<[1], [0], [0], [1], [0, 0, 1, 1], [], []>} : vector<8x32xbf16>, vector<32x128xbf16>, vector<8x128xf32> -> vector<8x128xf32>
      %c0_17 = arith.constant 0 : index
      %c0_18 = arith.constant 0 : index
      %20 = vector.load %arg6[%c0_17, %c0_18] : memref<1x128xf32, #tpu.memory_space<vmem>>, vector<1x128xf32>
      %21 = vector.broadcast %20 : vector<1x128xf32> to vector<8x128xf32>
      %22 = arith.addf %19, %21 : vector<8x128xf32>
      %c0_19 = arith.constant 0 : index
      %c0_20 = arith.constant 0 : index
      %23 = vector.load %arg7[%c0_19, %c0_20] : memref<8x128xf32, #tpu.memory_space<vmem>>, vector<8x128xf32>
      tpu.vector_store %arg7[%c0_19, %c0_20], %22 {strides = array<i32>} : memref<8x128xf32, #tpu.memory_space<vmem>>, vector<8x128xf32>,
    } else {
    }
    return
  }
  func.func @transform_0(%arg0: i32, %arg1: i32) -> (i32, i32) {
    %c0_i32 = arith.constant 0 : i32
    return %arg0, %arg1 : i32, i32
  }
  func.func @transform_1(%arg0: i32, %arg1: i32) -> (i32, i32) {
    %c0_i32 = arith.constant 0 : i32
    %c0_i32_0 = arith.constant 0 : i32
    return %arg1, %c0_i32 : i32, i32
  }
  func.func @transform_2(%arg0: i32, %arg1: i32) -> (i32, i32) {
    %c0_i32 = arith.constant 0 : i32
    %c0_i32_0 = arith.constant 0 : i32
    %c0_i32_1 = arith.constant 0 : i32
    return %c0_i32, %c0_i32_0 : i32, i32
  }
  func.func @transform_3(%arg0: i32, %arg1: i32) -> (i32, i32) {
    %c0_i32 = arith.constant 0 : i32
    %c0_i32_0 = arith.constant 0 : i32
    %c0_i32_1 = arith.constant 0 : i32
    return %c0_i32, %c0_i32_0 : i32, i32
  }
  func.func @transform_4(%arg0: i32, %arg1: i32) -> (i32, i32) {
    %c0_i32 = arith.constant 0 : i32
    %c0_i32_0 = arith.constant 0 : i32
    %c0_i32_1 = arith.constant 0 : i32
    return %c0_i32, %c0_i32_0 : i32, i32
  }
  func.func @transform_5(%arg0: i32, %arg1: i32) -> (i32, i32) {
    %c0_i32 = arith.constant 0 : i32
    %c0_i32_0 = arith.constant 0 : i32
    return %arg0, %c0_i32 : i32, i32
  }
}

</mosaic_0001>

<bundles_post_ra>
// kernel: tpu_custom_call.1
= control target key start
LH: loop header
LB: loop body
LE: loop exit
PB: predicated region body
PF: predicated region fallthrough
CT: control target
= control target key end

     0   :  { %10 = vsyncpa [#allocation4], 0  ;;  %s468_s0 = inlined_call_operand.hbm [shape: bf16[8,32], index: 0, kind: input, shape index: {}]   ;;  %s469_s1 = inlined_call_operand.hbm [shape: bf16[32,32], index: 1, kind: input, shape index: {}]   ;;  %s470_s2 = inlined_call_operand.vmem [shape: f32[1,32], index: 2, kind: input, shape index: {}]   ;;  %s471_s3 = inlined_call_operand.hbm [shape: bf16[32,128], index: 3, kind: input, shape index: {}]   ;;  %s472_s4 = inlined_call_operand.vmem [shape: f32[1,128], index: 4, kind: input, shape index: {}]   ;;  %s473_s5 = inlined_call_operand.hbm [shape: f32[8,128], index: 5, kind: output, shape index: {}]  }
   0x1   :  { %11 = vsyncpa [#allocation7], 0 }
   0x2   :  { %12 = vsyncpa [#allocation5], 0  ;;  %s366_s18 = smov [#allocation6]   ;;  %s272_s22 = scalar_lea.hbm %s469_s1, 256 }
   0x3   :  { %s28_s19 = sshll.u32 %s366_s18, 4  ;;  %p273_p0 = scmp.ne.s32.totalorder %s469_s1, %s272_s22  ;;  %s29_s19 = int_to_ptr.vmem [resolvable:$true] %s28_s19 }
   0x4   :  { %p276_p1 = scmp.lt.u32.totalorder %s272_s22, %s469_s1 }
   0x6   :  { %p278_p2 = pnand %p276_p1, %p273_p0 }
   0x8   :  { %281 = shalt.err (!%p278_p2)
}
   0x9   :  { %s282_s27 = scalar_lea.vmem %s29_s19, 256  ;;  %p287_p4 = scmp.lt.s32.totalorder %s29_s19, %s29_s19 }
   0xa   :  { %p283_p3 = scmp.ne.s32.totalorder %s29_s19, %s282_s27  ;;  %p288_p5 = scmp.lt.s32.totalorder %s282_s27, %s282_s27 }
   0xc   :  { %p289_p6 = por %p288_p5, %p287_p4 }
   0xe   :  { %p290_p7 = pnand %p289_p6, %p283_p3 }
  0x10   :  { %293 = shalt.err (!%p290_p7)
}
  0x11   :  { %s367_s28 = smov 64   ;;  %s368_s29 = smov 4  }
  0x12   :  { %34 = dma.hbm_to_vmem [thread:$0]  %s469_s1, 256, %s29_s19, [#allocation7], %s367_s28, %s367_s28, %s368_s29  }
  0x13   :  { %s369_s7 = smov [#allocation3]   ;;  %s370_s9 = smov [#allocation8]  }
  0x14   :  { %s19_s8 = sshll.u32 %s369_s7, 4  ;;  %s42_s10 = sshll.u32 %s370_s9, 4  ;;  %s20_s8 = int_to_ptr.vmem [resolvable:$true] %s19_s8  ;;  %s43_s10 = int_to_ptr.vmem [resolvable:$true] %s42_s10 }
  0x15   :  { %s294_s13 = scalar_lea.hbm %s468_s0, 64 }
  0x16   :  { %p295_p8 = scmp.ne.s32.totalorder %s468_s0, %s294_s13  ;;  %p298_p9 = scmp.lt.u32.totalorder %s294_s13, %s468_s0 }
  0x18   :  { %p300_p10 = pnand %p298_p9, %p295_p8 }
  0x1a   :  { %303 = shalt.err (!%p300_p10)
}
  0x1b   :  { %s304_s1 = scalar_lea.vmem %s20_s8, 64  ;;  %p309_p12 = scmp.lt.s32.totalorder %s20_s8, %s20_s8 }
  0x1c   :  { %p305_p11 = scmp.ne.s32.totalorder %s20_s8, %s304_s1  ;;  %p310_p13 = scmp.lt.s32.totalorder %s304_s1, %s304_s1 }
  0x1e   :  { %p311_p0 = por %p310_p13, %p309_p12 }
  0x20   :  { %p312_p1 = pnand %p311_p0, %p305_p11 }
  0x22   :  { %315 = shalt.err (!%p312_p1)
}
  0x23   :  { %22 = dma.hbm_to_vmem [thread:$0]  %s468_s0, 64, %s20_s8, [#allocation4]  }
  0x24   :  { %s316_s22 = scalar_lea.hbm %s471_s3, 256 }
  0x25   :  { %p317_p2 = scmp.ne.s32.totalorder %s471_s3, %s316_s22  ;;  %p320_p3 = scmp.lt.u32.totalorder %s316_s22, %s471_s3 }
  0x27   :  { %p322_p4 = pnand %p320_p3, %p317_p2 }
  0x29   :  { %325 = shalt.err (!%p322_p4)
}
  0x2a   :  { %s326_s27 = scalar_lea.vmem %s43_s10, 256  ;;  %p331_p6 = scmp.lt.s32.totalorder %s43_s10, %s43_s10 }
  0x2b   :  { %p327_p5 = scmp.ne.s32.totalorder %s43_s10, %s326_s27  ;;  %p332_p7 = scmp.lt.s32.totalorder %s326_s27, %s326_s27 }
  0x2d   :  { %p333_p8 = por %p332_p7, %p331_p6 }
  0x2f   :  { %p334_p9 = pnand %p333_p8, %p327_p5 }
  0x31   :  { %337 = shalt.err (!%p334_p9)
}
  0x32   :  { %48 = dma.hbm_to_vmem [thread:$0]  %s471_s3, 256, %s43_s10, [#allocation7], %s367_s28, %s367_s28, %s368_s29  }
  0x33   :  { %360 = dma.done.wait [#allocation4], 64  }
  0x34   :  { %361 = vsyncadd [#allocation4], 4294967232 }
  0x35   :  { %362 = dma.done.wait [#allocation7], 512  }
  0x36   :  { %363 = vsyncadd [#allocation7], 4294966784  ;;  %vm65_vm0 = vcmask 261120   ;;  %v371_v0 = vmov 0.0   ;;  %vm372_vm1 = vmmov 0   ;;  %v266_v1 = vld [vmem:[#allocation6] sm:$0xff]  }
  0x37   :  { %242 = vmatprep.subr.bf16.mxu0 %v371_v0  ;;  %246 = vmatprep.mubr.msk.bf16.mxu0 %vm372_vm1, %v371_v0  ;;  %66 = vst.msk [vmem:[#allocation2] sm:$0xff] %vm65_vm0, %v371_v0  ;;  %v267_v2 = vld [vmem:[#allocation6 + $0x8] sm:$0xff]   ;;  %v68_v3 = vld [vmem:[#allocation3] sm:$0xf]  ;;  %v268_v4 = vld [vmem:[#allocation8] sm:$0xff]   ;;  %s373_s7 = smov [#allocation9]  }
  0x38   :  { %250 = vmatprep.subr.bf16.mxu1 %v371_v0  ;;  %254 = vmatprep.mubr.msk.bf16.mxu1 %vm372_vm1, %v371_v0  ;;  %v269_v5 = vld [vmem:[#allocation8 + $0x8] sm:$0xff]   ;;  %v231_v12 = vld [vmem:[%s470_s2] ss:$0 sm:$0xff]  ;;  %s218_s8 = sshll.u32 %s373_s7, 4  ;;  %s219_s8 = int_to_ptr.vmem [resolvable:$true] %s218_s8 }
  0x39   :  { %243 = vmatpush3.bf16.msra.mxu0 %v266_v1  ;;  %251 = vmatpush3.bf16.msra.mxu1 %v268_v4  ;;  %v232_v17 = vld [vmem:[%s472_s4] ss:$0 sm:$0xff]  ;;  %s338_s2 = scalar_lea.vmem %s219_s8, 128  ;;  %p343_p11 = scmp.lt.s32.totalorder %s219_s8, %s219_s8 }
  0x3a   :  { %244 = vmatprep.subr.bf16.mxu0 %v371_v0  ;;  %252 = vmatprep.subr.bf16.mxu1 %v371_v0  ;;  %p339_p10 = scmp.ne.s32.totalorder %s219_s8, %s338_s2  ;;  %p344_p12 = scmp.lt.s32.totalorder %s338_s2, %s338_s2 }
  0x3c   :  { %p345_p13 = por %p344_p12, %p343_p11 }
  0x3d   :  { %245 = vmatpush3.bf16.msra.mxu0 %v267_v2  ;;  %253 = vmatpush3.bf16.msra.mxu1 %v269_v5 }
  0x3e   :  { %v67_v6 = vld [vmem:[#allocation2] sm:$0xff]  ;;  %p346_p0 = pnand %p345_p13, %p339_p10 }
  0x40   :  { %247 = vmatmul.mubr.msk.bf16.vlgmr.msra.gmra.mrb[0].mxu0 %vm65_vm0, %v68_v3 }
 0x113   :  { %v123_v7 = vpop.f32.mrb[0].mxu0 }
 0x114   :  { %v129_v8 = vadd.f32 %v123_v7, %v67_v6  ;;  %v248_v9 = vpop.f32.mrb[1].mxu0 }
 0x115   :  { %v126_v10 = vpop.f32.mrb[2].mxu0 }
 0x116   :  { %130 = vst.msk [vmem:[#allocation2] sm:$0xff] %vm65_vm0, %v129_v8  ;;  %v249_v11 = vpop.f32.mrb[3].mxu0 }
 0x11d   :  { %v134_v13 = vld [vmem:[#allocation2] sm:$0xff] }
 0x11e   :  { %v142_v14 = vadd.f32 %v231_v12, %v134_v13 }
 0x120   :  { %270 = vtanh.f32 %v142_v14 }
 0x12a   :  { %v271_v15 = vpop.eup %270 }
 0x12b   :  { %v144_v16 = vpack.c.bf16 %v271_v15, %v271_v15 }
 0x12d   :  { %255 = vmatmul.mubr.msk.bf16.vlgmr.msra.gmra.mrb[0].mxu1 %vm65_vm0, %v144_v16 }
 0x200   :  { %v205_v18 = vpop.f32.mrb[0].mxu1 }
 0x201   :  { %v206_v19 = vadd.f32 %v232_v17, %v205_v18  ;;  %v256_v20 = vpop.f32.mrb[1].mxu1 }
 0x202   :  { %v208_v21 = vpop.f32.mrb[2].mxu1 }
 0x203   :  { %211 = vst [vmem:[#allocation9] sm:$0xff] %v206_v19  ;;  %v257_v22 = vpop.f32.mrb[3].mxu1 }
 0x204   :  { %349 = shalt.err (!%p346_p0)
}
 0x205   :  { %s350_s4 = scalar_lea.hbm %s473_s5, 128 }
 0x206   :  { %p351_p1 = scmp.ne.s32.totalorder %s473_s5, %s350_s4  ;;  %p354_p2 = scmp.lt.u32.totalorder %s350_s4, %s473_s5 }
 0x208   :  { %p356_p3 = pnand %p354_p2, %p351_p1 }
 0x20a   :  { %359 = shalt.err (!%p356_p3)
}
 0x20b   :  { %221 = dma.vmem_to_hbm [thread:$0]  %s219_s8, 128, %s473_s5, [#allocation5]  }
 0x20c   :  { %364 = dma.done.wait [#allocation5], 128  }
 0x20d   :  { %365 = vsyncadd [#allocation5], 4294967168 }
 0x20e   :  { %225 = vsyncpa [#allocation4], 1 }
 0x20f   :  { %226 = vsyncpa [#allocation7], 1 }
 0x210   :  { %227 = vsyncpa [#allocation5], 1 }

// kernel: tpu_custom_call.1
= control target key start
LH: loop header
LB: loop body
LE: loop exit
PB: predicated region body
PF: predicated region fallthrough
CT: control target
= control target key end

     0   :  { %10 = vsyncpa [#allocation4], 0  ;;  %s468_s0 = inlined_call_operand.hbm [shape: bf16[8,32], index: 0, kind: input, shape index: {}]   ;;  %s469_s1 = inlined_call_operand.hbm [shape: bf16[32,32], index: 1, kind: input, shape index: {}]   ;;  %s470_s2 = inlined_call_operand.vmem [shape: f32[1,32], index: 2, kind: input, shape index: {}]   ;;  %s471_s3 = inlined_call_operand.hbm [shape: bf16[32,128], index: 3, kind: input, shape index: {}]   ;;  %s472_s4 = inlined_call_operand.vmem [shape: f32[1,128], index: 4, kind: input, shape index: {}]   ;;  %s473_s5 = inlined_call_operand.hbm [shape: f32[8,128], index: 5, kind: output, shape index: {}]  }
   0x1   :  { %11 = vsyncpa [#allocation7], 0 }
   0x2   :  { %12 = vsyncpa [#allocation5], 0  ;;  %s366_s18 = smov [#allocation6]   ;;  %s272_s22 = scalar_lea.hbm %s469_s1, 256 }
   0x3   :  { %s28_s19 = sshll.u32 %s366_s18, 4  ;;  %p273_p0 = scmp.ne.s32.totalorder %s469_s1, %s272_s22  ;;  %s29_s19 = int_to_ptr.vmem [resolvable:$true] %s28_s19 }
   0x4   :  { %p276_p1 = scmp.lt.u32.totalorder %s272_s22, %s469_s1 }
   0x6   :  { %p278_p2 = pnand %p276_p1, %p273_p0 }
   0x8   :  { %281 = shalt.err (!%p278_p2)
}
   0x9   :  { %s282_s27 = scalar_lea.vmem %s29_s19, 256  ;;  %p287_p4 = scmp.lt.s32.totalorder %s29_s19, %s29_s19 }
   0xa   :  { %p283_p3 = scmp.ne.s32.totalorder %s29_s19, %s282_s27  ;;  %p288_p5 = scmp.lt.s32.totalorder %s282_s27, %s282_s27 }
   0xc   :  { %p289_p6 = por %p288_p5, %p287_p4 }
   0xe   :  { %p290_p7 = pnand %p289_p6, %p283_p3 }
  0x10   :  { %293 = shalt.err (!%p290_p7)
}
  0x11   :  { %s367_s28 = smov 64   ;;  %s368_s29 = smov 4  }
  0x12   :  { %34 = dma.hbm_to_vmem [thread:$0]  %s469_s1, 256, %s29_s19, [#allocation7], %s367_s28, %s367_s28, %s368_s29  }
  0x13   :  { %s369_s7 = smov [#allocation3]   ;;  %s370_s9 = smov [#allocation8]  }
  0x14   :  { %s19_s8 = sshll.u32 %s369_s7, 4  ;;  %s42_s10 = sshll.u32 %s370_s9, 4  ;;  %s20_s8 = int_to_ptr.vmem [resolvable:$true] %s19_s8  ;;  %s43_s10 = int_to_ptr.vmem [resolvable:$true] %s42_s10 }
  0x15   :  { %s294_s13 = scalar_lea.hbm %s468_s0, 64 }
  0x16   :  { %p295_p8 = scmp.ne.s32.totalorder %s468_s0, %s294_s13  ;;  %p298_p9 = scmp.lt.u32.totalorder %s294_s13, %s468_s0 }
  0x18   :  { %p300_p10 = pnand %p298_p9, %p295_p8 }
  0x1a   :  { %303 = shalt.err (!%p300_p10)
}
  0x1b   :  { %s304_s1 = scalar_lea.vmem %s20_s8, 64  ;;  %p309_p12 = scmp.lt.s32.totalorder %s20_s8, %s20_s8 }
  0x1c   :  { %p305_p11 = scmp.ne.s32.totalorder %s20_s8, %s304_s1  ;;  %p310_p13 = scmp.lt.s32.totalorder %s304_s1, %s304_s1 }
  0x1e   :  { %p311_p0 = por %p310_p13, %p309_p12 }
  0x20   :  { %p312_p1 = pnand %p311_p0, %p305_p11 }
  0x22   :  { %315 = shalt.err (!%p312_p1)
}
  0x23   :  { %22 = dma.hbm_to_vmem [thread:$0]  %s468_s0, 64, %s20_s8, [#allocation4]  }
  0x24   :  { %s316_s22 = scalar_lea.hbm %s471_s3, 256 }
  0x25   :  { %p317_p2 = scmp.ne.s32.totalorder %s471_s3, %s316_s22  ;;  %p320_p3 = scmp.lt.u32.totalorder %s316_s22, %s471_s3 }
  0x27   :  { %p322_p4 = pnand %p320_p3, %p317_p2 }
  0x29   :  { %325 = shalt.err (!%p322_p4)
}
  0x2a   :  { %s326_s27 = scalar_lea.vmem %s43_s10, 256  ;;  %p331_p6 = scmp.lt.s32.totalorder %s43_s10, %s43_s10 }
  0x2b   :  { %p327_p5 = scmp.ne.s32.totalorder %s43_s10, %s326_s27  ;;  %p332_p7 = scmp.lt.s32.totalorder %s326_s27, %s326_s27 }
  0x2d   :  { %p333_p8 = por %p332_p7, %p331_p6 }
  0x2f   :  { %p334_p9 = pnand %p333_p8, %p327_p5 }
  0x31   :  { %337 = shalt.err (!%p334_p9)
}
  0x32   :  { %48 = dma.hbm_to_vmem [thread:$0]  %s471_s3, 256, %s43_s10, [#allocation7], %s367_s28, %s367_s28, %s368_s29  }
  0x33   :  { %360 = dma.done.wait [#allocation4], 64  }
  0x34   :  { %361 = vsyncadd [#allocation4], 4294967232 }
  0x35   :  { %362 = dma.done.wait [#allocation7], 512  }
  0x36   :  { %363 = vsyncadd [#allocation7], 4294966784  ;;  %vm65_vm0 = vcmask 261120   ;;  %v371_v0 = vmov 0.0   ;;  %vm372_vm1 = vmmov 0   ;;  %v266_v1 = vld [vmem:[#allocation6] sm:$0xff]  }
  0x37   :  { %242 = vmatprep.subr.bf16.mxu0 %v371_v0  ;;  %246 = vmatprep.mubr.msk.bf16.mxu0 %vm372_vm1, %v371_v0  ;;  %66 = vst.msk [vmem:[#allocation2] sm:$0xff] %vm65_vm0, %v371_v0  ;;  %v267_v2 = vld [vmem:[#allocation6 + $0x8] sm:$0xff]   ;;  %v68_v3 = vld [vmem:[#allocation3] sm:$0xf]  ;;  %v268_v4 = vld [vmem:[#allocation8] sm:$0xff]   ;;  %s373_s7 = smov [#allocation9]  }
  0x38   :  { %250 = vmatprep.subr.bf16.mxu1 %v371_v0  ;;  %254 = vmatprep.mubr.msk.bf16.mxu1 %vm372_vm1, %v371_v0  ;;  %v269_v5 = vld [vmem:[#allocation8 + $0x8] sm:$0xff]   ;;  %v231_v12 = vld [vmem:[%s470_s2] ss:$0 sm:$0xff]  ;;  %s218_s8 = sshll.u32 %s373_s7, 4  ;;  %s219_s8 = int_to_ptr.vmem [resolvable:$true] %s218_s8 }
  0x39   :  { %243 = vmatpush3.bf16.msra.mxu0 %v266_v1  ;;  %251 = vmatpush3.bf16.msra.mxu1 %v268_v4  ;;  %v232_v17 = vld [vmem:[%s472_s4] ss:$0 sm:$0xff]  ;;  %s338_s2 = scalar_lea.vmem %s219_s8, 128  ;;  %p343_p11 = scmp.lt.s32.totalorder %s219_s8, %s219_s8 }
  0x3a   :  { %244 = vmatprep.subr.bf16.mxu0 %v371_v0  ;;  %252 = vmatprep.subr.bf16.mxu1 %v371_v0  ;;  %p339_p10 = scmp.ne.s32.totalorder %s219_s8, %s338_s2  ;;  %p344_p12 = scmp.lt.s32.totalorder %s338_s2, %s338_s2 }
  0x3c   :  { %p345_p13 = por %p344_p12, %p343_p11 }
  0x3d   :  { %245 = vmatpush3.bf16.msra.mxu0 %v267_v2  ;;  %253 = vmatpush3.bf16.msra.mxu1 %v269_v5 }
  0x3e   :  { %v67_v6 = vld [vmem:[#allocation2] sm:$0xff]  ;;  %p346_p0 = pnand %p345_p13, %p339_p10 }
  0x40   :  { %247 = vmatmul.mubr.msk.bf16.vlgmr.msra.gmra.mrb[0].mxu0 %vm65_vm0, %v68_v3 }
 0x113   :  { %v123_v7 = vpop.f32.mrb[0].mxu0 }
 0x114   :  { %v129_v8 = vadd.f32 %v123_v7, %v67_v6  ;;  %v248_v9 = vpop.f32.mrb[1].mxu0 }
 0x115   :  { %v126_v10 = vpop.f32.mrb[2].mxu0 }
 0x116   :  { %130 = vst.msk [vmem:[#allocation2] sm:$0xff] %vm65_vm0, %v129_v8  ;;  %v249_v11 = vpop.f32.mrb[3].mxu0 }
 0x11d   :  { %v134_v13 = vld [vmem:[#allocation2] sm:$0xff] }
 0x11e   :  { %v142_v14 = vadd.f32 %v231_v12, %v134_v13 }
 0x120   :  { %270 = vtanh.f32 %v142_v14 }
 0x12a   :  { %v271_v15 = vpop.eup %270 }
 0x12b   :  { %v144_v16 = vpack.c.bf16 %v271_v15, %v271_v15 }
 0x12d   :  { %255 = vmatmul.mubr.msk.bf16.vlgmr.msra.gmra.mrb[0].mxu1 %vm65_vm0, %v144_v16 }
 0x200   :  { %v205_v18 = vpop.f32.mrb[0].mxu1 }
 0x201   :  { %v206_v19 = vadd.f32 %v232_v17, %v205_v18  ;;  %v256_v20 = vpop.f32.mrb[1].mxu1 }
 0x202   :  { %v208_v21 = vpop.f32.mrb[2].mxu1 }
 0x203   :  { %211 = vst [vmem:[#allocation9] sm:$0xff] %v206_v19  ;;  %v257_v22 = vpop.f32.mrb[3].mxu1 }
 0x204   :  { %349 = shalt.err (!%p346_p0)
}
 0x205   :  { %s350_s4 = scalar_lea.hbm %s473_s5, 128 }
 0x206   :  { %p351_p1 = scmp.ne.s32.totalorder %s473_s5, %s350_s4  ;;  %p354_p2 = scmp.lt.u32.totalorder %s350_s4, %s473_s5 }
 0x208   :  { %p356_p3 = pnand %p354_p2, %p351_p1 }
 0x20a   :  { %359 = shalt.err (!%p356_p3)
}
 0x20b   :  { %221 = dma.vmem_to_hbm [thread:$0]  %s219_s8, 128, %s473_s5, [#allocation5]  }
 0x20c   :  { %364 = dma.done.wait [#allocation5], 128  }
 0x20d   :  { %365 = vsyncadd [#allocation5], 4294967168 }
 0x20e   :  { %225 = vsyncpa [#allocation4], 1 }
 0x20f   :  { %226 = vsyncpa [#allocation7], 1 }
 0x210   :  { %227 = vsyncpa [#allocation5], 1 }

</bundles_post_ra>
